<compile_context>
chip_gen: v7x
topology: tpu7x:2x2x1
jax: 0.10.0
libtpu: 0.0.40
codegen_flags: <defaults>
</compile_context>

<pallas_src>
import jax
import jax.numpy as jnp
from jax import lax
from jax.experimental import pallas as pl
from jax.experimental.pallas import tpu as pltpu

IN_DIM, HIDDEN, OUT_DIM = 4, 5, 3

LANES = 128
SUBLANES = 8
QUANTUM = LANES * SUBLANES            # 1024-sample padding quantum
MAX_TILE_SAMPLES = 256 * 1024         # ~14.7 MiB double-buffered VMEM -> v7x-safe
CHUNK_ROWS = 8                        # inner-loop chunk: one (8,128) vreg / feature


def _round_up(n, m):
    return ((n + m - 1) // m) * m


def _sigmoid(z):
    # sigmoid(z) == 0.5 * tanh(z / 2) + 0.5  (exact identity, single EUP op).
    return 0.5 * jnp.tanh(0.5 * z) + 0.5


def mlp_kernel(w1_ref, b1_ref, w2_ref, b2_ref, x_ref, o_ref):
    """One batch tile; batch occupies the (sublane, lane) axes.

    x_ref : (IN_DIM,  rows, 128) f32, VMEM
    w1_ref: (HIDDEN, IN_DIM)     f32, SMEM   (PyTorch (out, in) layout)
    b1_ref: (HIDDEN,)            f32, SMEM
    w2_ref: (OUT_DIM, HIDDEN)    f32, SMEM
    b2_ref: (OUT_DIM,)           f32, SMEM
    o_ref : (OUT_DIM, rows, 128) f32, VMEM
    """
    rows = x_ref.shape[1]
    n_chunks = rows // CHUNK_ROWS

    # Hoist all 28 weights + 8 biases out of the inner loop (SMEM scalar reads).
    w1 = [[w1_ref[j, k] for k in range(IN_DIM)] for j in range(HIDDEN)]
    b1 = [b1_ref[j] for j in range(HIDDEN)]
    w2 = [[w2_ref[i, j] for j in range(HIDDEN)] for i in range(OUT_DIM)]
    b2 = [b2_ref[i] for i in range(OUT_DIM)]

    def body(c, carry):
        r0 = pl.multiple_of(c * CHUNK_ROWS, CHUNK_ROWS)
        # Dense (CHUNK_ROWS, 128) per-feature tiles -> full vregs.
        xk = [x_ref[k, pl.ds(r0, CHUNK_ROWS), :] for k in range(IN_DIM)]

        # Layer 1: h[j] = sigmoid(sum_k w1[j,k] * x[k] + b1[j])   (20 FMAs)
        h = []
        for j in range(HIDDEN):
            acc = xk[0] * w1[j][0]
            for k in range(1, IN_DIM):
                acc = acc + xk[k] * w1[j][k]
            h.append(_sigmoid(acc + b1[j]))

        # Layer 2: o[i] = sigmoid(sum_j w2[i,j] * h[j] + b2[i])   (15 FMAs)
        # Each output row is stored directly (no concatenate / sublane shuffle).
        for i in range(OUT_DIM):
            acc = h[0] * w2[i][0]
            for j in range(1, HIDDEN):
                acc = acc + h[j] * w2[i][j]
            o_ref[i, pl.ds(r0, CHUNK_ROWS), :] = _sigmoid(acc + b2[i]).astype(o_ref.dtype)
        return carry

    lax.fori_loop(0, n_chunks, body, 0)


def _tiling(batch, max_tile_samples):
    """Pick (padded_batch, rows_per_tile, n_tiles) with padding quantum decoupled
    from the tile size and >=2 tiles when there is enough work (v7x megacore)."""
    padded = _round_up(max(batch, 1), QUANTUM)
    n_rows = padded // LANES                              # multiple of 8
    max_rows = max(max_tile_samples // LANES, SUBLANES)
    n_tiles = pl.cdiv(n_rows, max_rows)
    if n_tiles == 1 and n_rows >= 2 * SUBLANES:
        n_tiles = 2                                       # shard across both TCs
    rows_per_tile = _round_up(pl.cdiv(n_rows, n_tiles), SUBLANES)
    n_rows = n_tiles * rows_per_tile
    return n_rows * LANES, rows_per_tile, n_tiles


def mlp_forward(x, w1, b1, w2, b2, *, max_tile_samples=MAX_TILE_SAMPLES):
    """x: (B, 4) f32. Weights in PyTorch layout: w1 (5,4), b1 (5,), w2 (3,5), b2 (3,).

    Returns (B, 3) f32 == sigmoid(sigmoid(x @ w1.T + b1) @ w2.T + b2).
    """
    B = x.shape[0]
    padded, rows_per_tile, n_tiles = _tiling(B, max_tile_samples)
    n_rows = padded // LANES

    # Single fused layout pass: pad + transpose + reshape to (IN_DIM, rows, 128)
    # so the batch fills both sublanes and lanes inside the kernel.
    x3 = (jnp.pad(x.astype(jnp.float32), ((0, padded - B), (0, 0)))
          .T.reshape(IN_DIM, n_rows, LANES))

    smem = pl.BlockSpec(memory_space=pltpu.MemorySpace.SMEM)

    out3 = pl.pallas_call(
        mlp_kernel,
        out_shape=jax.ShapeDtypeStruct((OUT_DIM, n_rows, LANES), jnp.float32),
        grid=(n_tiles,),
        in_specs=[
            smem,  # w1 (5, 4) resident scalars
            smem,  # b1 (5,)
            smem,  # w2 (3, 5)
            smem,  # b2 (3,)
            pl.BlockSpec((IN_DIM, rows_per_tile, LANES), lambda i: (0, i, 0)),
        ],
        out_specs=pl.BlockSpec((OUT_DIM, rows_per_tile, LANES), lambda i: (0, i, 0)),
        compiler_params=pltpu.CompilerParams(
            dimension_semantics=("parallel",),     # batch tiles shard across TCs
            vmem_limit_bytes=32 * 1024 * 1024,     # headroom; v7x-safe (<= 64 MiB)
        ),
    )(w1.astype(jnp.float32), b1.astype(jnp.float32),
      w2.astype(jnp.float32), b2.astype(jnp.float32), x3)

    # Back to the nn.Module's (B, 3) layout (one wrapper-side transpose pass).
    return out3.reshape(OUT_DIM, padded)[:, :B].T


def init_params(key):
    """PyTorch nn.Linear default init (uniform +/- 1/sqrt(fan_in)), PyTorch layout."""
    k1, k2, k3, k4 = jax.random.split(key, 4)
    bound1 = 1.0 / jnp.sqrt(IN_DIM)
    bound2 = 1.0 / jnp.sqrt(HIDDEN)
    w1 = jax.random.uniform(k1, (HIDDEN, IN_DIM), jnp.float32, -bound1, bound1)
    b1 = jax.random.uniform(k2, (HIDDEN,), jnp.float32, -bound1, bound1)
    w2 = jax.random.uniform(k3, (OUT_DIM, HIDDEN), jnp.float32, -bound2, bound2)
    b2 = jax.random.uniform(k4, (OUT_DIM,), jnp.float32, -bound2, bound2)
    return w1, b1, w2, b2


def _reference(x, w1, b1, w2, b2):
    return jax.nn.sigmoid(jax.nn.sigmoid(x @ w1.T + b1) @ w2.T + b2)


if __name__ == "__main__":
    key = jax.random.PRNGKey(0)
    kx, kp, kx2 = jax.random.split(key, 3)
    w1, b1, w2, b2 = init_params(kp)

    # Small demo batch matching the nn.Module's (B, 4) input.
    batch = 8
    x = jax.random.normal(kx, (batch, IN_DIM), jnp.float32)
    out = jax.block_until_ready(mlp_forward(x, w1, b1, w2, b2))
    ref = _reference(x, w1, b1, w2, b2)
    assert out.shape == (batch, OUT_DIM)
    assert jnp.allclose(out, ref, atol=1e-5), "mismatch vs reference (B=8)"

    # Ragged batch exercising the multi-tile grid, multi-chunk inner loop and padding.
    batch2 = 2500
    x2 = jax.random.normal(kx2, (batch2, IN_DIM), jnp.float32)
    out2 = jax.block_until_ready(mlp_forward(x2, w1, b1, w2, b2))
    ref2 = _reference(x2, w1, b1, w2, b2)
    assert out2.shape == (batch2, OUT_DIM)
    assert jnp.allclose(out2, ref2, atol=1e-5), "mismatch vs reference (B=2500)"

    print("KERNEL_OK")
</pallas_src>

<mosaic_0001>
module attributes {stable_mosaic.version = 11 : i64} {
  func.func @mlp_kernel(%arg0: i32, %arg1: memref<5x4xf32, #tpu.memory_space<smem>>, %arg2: memref<5xf32, #tpu.memory_space<smem>>, %arg3: memref<3x5xf32, #tpu.memory_space<smem>>, %arg4: memref<3xf32, #tpu.memory_space<smem>>, %arg5: memref<4x8x128xf32, #tpu.memory_space<vmem>>, %arg6: memref<3x8x128xf32, #tpu.memory_space<vmem>>) attributes {dimension_semantics = [#tpu.dimension_semantics<parallel>], iteration_bounds = array<i64: 1>, scalar_prefetch = 0 : i64, scratch_operands = 0 : i64, tpu.core_type = #tpu.core_type<tc>, window_params = [{transform_indices = @transform_0, window_bounds = array<i64: 5, 4>}, {transform_indices = @transform_1, window_bounds = array<i64: 5>}, {transform_indices = @transform_2, window_bounds = array<i64: 3, 5>}, {transform_indices = @transform_3, window_bounds = array<i64: 3>}, {transform_indices = @transform_4, window_bounds = array<i64: 4, 8, 128>}, {transform_indices = @transform_5, window_bounds = array<i64: 3, 8, 128>}]} {
    %c0 = arith.constant 0 : index
    %c0_0 = arith.constant 0 : index
    %0 = memref.load %arg1[%c0, %c0_0] : memref<5x4xf32, #tpu.memory_space<smem>>
    %c0_1 = arith.constant 0 : index
    %c1 = arith.constant 1 : index
    %1 = memref.load %arg1[%c0_1, %c1] : memref<5x4xf32, #tpu.memory_space<smem>>
    %c0_2 = arith.constant 0 : index
    %c2 = arith.constant 2 : index
    %2 = memref.load %arg1[%c0_2, %c2] : memref<5x4xf32, #tpu.memory_space<smem>>
    %c0_3 = arith.constant 0 : index
    %c3 = arith.constant 3 : index
    %3 = memref.load %arg1[%c0_3, %c3] : memref<5x4xf32, #tpu.memory_space<smem>>
    %c1_4 = arith.constant 1 : index
    %c0_5 = arith.constant 0 : index
    %4 = memref.load %arg1[%c1_4, %c0_5] : memref<5x4xf32, #tpu.memory_space<smem>>
    %c1_6 = arith.constant 1 : index
    %c1_7 = arith.constant 1 : index
    %5 = memref.load %arg1[%c1_6, %c1_7] : memref<5x4xf32, #tpu.memory_space<smem>>
    %c1_8 = arith.constant 1 : index
    %c2_9 = arith.constant 2 : index
    %6 = memref.load %arg1[%c1_8, %c2_9] : memref<5x4xf32, #tpu.memory_space<smem>>
    %c1_10 = arith.constant 1 : index
    %c3_11 = arith.constant 3 : index
    %7 = memref.load %arg1[%c1_10, %c3_11] : memref<5x4xf32, #tpu.memory_space<smem>>
    %c2_12 = arith.constant 2 : index
    %c0_13 = arith.constant 0 : index
    %8 = memref.load %arg1[%c2_12, %c0_13] : memref<5x4xf32, #tpu.memory_space<smem>>
    %c2_14 = arith.constant 2 : index
    %c1_15 = arith.constant 1 : index
    %9 = memref.load %arg1[%c2_14, %c1_15] : memref<5x4xf32, #tpu.memory_space<smem>>
    %c2_16 = arith.constant 2 : index
    %c2_17 = arith.constant 2 : index
    %10 = memref.load %arg1[%c2_16, %c2_17] : memref<5x4xf32, #tpu.memory_space<smem>>
    %c2_18 = arith.constant 2 : index
    %c3_19 = arith.constant 3 : index
    %11 = memref.load %arg1[%c2_18, %c3_19] : memref<5x4xf32, #tpu.memory_space<smem>>
    %c3_20 = arith.constant 3 : index
    %c0_21 = arith.constant 0 : index
    %12 = memref.load %arg1[%c3_20, %c0_21] : memref<5x4xf32, #tpu.memory_space<smem>>
    %c3_22 = arith.constant 3 : index
    %c1_23 = arith.constant 1 : index
    %13 = memref.load %arg1[%c3_22, %c1_23] : memref<5x4xf32, #tpu.memory_space<smem>>
    %c3_24 = arith.constant 3 : index
    %c2_25 = arith.constant 2 : index
    %14 = memref.load %arg1[%c3_24, %c2_25] : memref<5x4xf32, #tpu.memory_space<smem>>
    %c3_26 = arith.constant 3 : index
    %c3_27 = arith.constant 3 : index
    %15 = memref.load %arg1[%c3_26, %c3_27] : memref<5x4xf32, #tpu.memory_space<smem>>
    %c4 = arith.constant 4 : index
    %c0_28 = arith.constant 0 : index
    %16 = memref.load %arg1[%c4, %c0_28] : memref<5x4xf32, #tpu.memory_space<smem>>
    %c4_29 = arith.constant 4 : index
    %c1_30 = arith.constant 1 : index
    %17 = memref.load %arg1[%c4_29, %c1_30] : memref<5x4xf32, #tpu.memory_space<smem>>
    %c4_31 = arith.constant 4 : index
    %c2_32 = arith.constant 2 : index
    %18 = memref.load %arg1[%c4_31, %c2_32] : memref<5x4xf32, #tpu.memory_space<smem>>
    %c4_33 = arith.constant 4 : index
    %c3_34 = arith.constant 3 : index
    %19 = memref.load %arg1[%c4_33, %c3_34] : memref<5x4xf32, #tpu.memory_space<smem>>
    %c0_35 = arith.constant 0 : index
    %20 = memref.load %arg2[%c0_35] : memref<5xf32, #tpu.memory_space<smem>>
    %c1_36 = arith.constant 1 : index
    %21 = memref.load %arg2[%c1_36] : memref<5xf32, #tpu.memory_space<smem>>
    %c2_37 = arith.constant 2 : index
    %22 = memref.load %arg2[%c2_37] : memref<5xf32, #tpu.memory_space<smem>>
    %c3_38 = arith.constant 3 : index
    %23 = memref.load %arg2[%c3_38] : memref<5xf32, #tpu.memory_space<smem>>
    %c4_39 = arith.constant 4 : index
    %24 = memref.load %arg2[%c4_39] : memref<5xf32, #tpu.memory_space<smem>>
    %c0_40 = arith.constant 0 : index
    %c0_41 = arith.constant 0 : index
    %25 = memref.load %arg3[%c0_40, %c0_41] : memref<3x5xf32, #tpu.memory_space<smem>>
    %c0_42 = arith.constant 0 : index
    %c1_43 = arith.constant 1 : index
    %26 = memref.load %arg3[%c0_42, %c1_43] : memref<3x5xf32, #tpu.memory_space<smem>>
    %c0_44 = arith.constant 0 : index
    %c2_45 = arith.constant 2 : index
    %27 = memref.load %arg3[%c0_44, %c2_45] : memref<3x5xf32, #tpu.memory_space<smem>>
    %c0_46 = arith.constant 0 : index
    %c3_47 = arith.constant 3 : index
    %28 = memref.load %arg3[%c0_46, %c3_47] : memref<3x5xf32, #tpu.memory_space<smem>>
    %c0_48 = arith.constant 0 : index
    %c4_49 = arith.constant 4 : index
    %29 = memref.load %arg3[%c0_48, %c4_49] : memref<3x5xf32, #tpu.memory_space<smem>>
    %c1_50 = arith.constant 1 : index
    %c0_51 = arith.constant 0 : index
    %30 = memref.load %arg3[%c1_50, %c0_51] : memref<3x5xf32, #tpu.memory_space<smem>>
    %c1_52 = arith.constant 1 : index
    %c1_53 = arith.constant 1 : index
    %31 = memref.load %arg3[%c1_52, %c1_53] : memref<3x5xf32, #tpu.memory_space<smem>>
    %c1_54 = arith.constant 1 : index
    %c2_55 = arith.constant 2 : index
    %32 = memref.load %arg3[%c1_54, %c2_55] : memref<3x5xf32, #tpu.memory_space<smem>>
    %c1_56 = arith.constant 1 : index
    %c3_57 = arith.constant 3 : index
    %33 = memref.load %arg3[%c1_56, %c3_57] : memref<3x5xf32, #tpu.memory_space<smem>>
    %c1_58 = arith.constant 1 : index
    %c4_59 = arith.constant 4 : index
    %34 = memref.load %arg3[%c1_58, %c4_59] : memref<3x5xf32, #tpu.memory_space<smem>>
    %c2_60 = arith.constant 2 : index
    %c0_61 = arith.constant 0 : index
    %35 = memref.load %arg3[%c2_60, %c0_61] : memref<3x5xf32, #tpu.memory_space<smem>>
    %c2_62 = arith.constant 2 : index
    %c1_63 = arith.constant 1 : index
    %36 = memref.load %arg3[%c2_62, %c1_63] : memref<3x5xf32, #tpu.memory_space<smem>>
    %c2_64 = arith.constant 2 : index
    %c2_65 = arith.constant 2 : index
    %37 = memref.load %arg3[%c2_64, %c2_65] : memref<3x5xf32, #tpu.memory_space<smem>>
    %c2_66 = arith.constant 2 : index
    %c3_67 = arith.constant 3 : index
    %38 = memref.load %arg3[%c2_66, %c3_67] : memref<3x5xf32, #tpu.memory_space<smem>>
    %c2_68 = arith.constant 2 : index
    %c4_69 = arith.constant 4 : index
    %39 = memref.load %arg3[%c2_68, %c4_69] : memref<3x5xf32, #tpu.memory_space<smem>>
    %c0_70 = arith.constant 0 : index
    %40 = memref.load %arg4[%c0_70] : memref<3xf32, #tpu.memory_space<smem>>
    %c1_71 = arith.constant 1 : index
    %41 = memref.load %arg4[%c1_71] : memref<3xf32, #tpu.memory_space<smem>>
    %c2_72 = arith.constant 2 : index
    %42 = memref.load %arg4[%c2_72] : memref<3xf32, #tpu.memory_space<smem>>
    %c0_i32 = arith.constant 0 : i32
    %c8_i32 = arith.constant 8 : i32
    %43 = arith.muli %c0_i32, %c8_i32 : i32
    %44 = tpu.assume_multiple %43, 8 : i32
    %c0_73 = arith.constant 0 : index
    %45 = arith.index_cast %44 : i32 to index
    %c0_74 = arith.constant 0 : index
    %46 = vector.load %arg5[%c0_73, %45, %c0_74] : memref<4x8x128xf32, #tpu.memory_space<vmem>>, vector<1x8x128xf32>
    %47 = vector.shape_cast %46 : vector<1x8x128xf32> to vector<8x128xf32>
    %c1_75 = arith.constant 1 : index
    %48 = arith.index_cast %44 : i32 to index
    %c0_76 = arith.constant 0 : index
    %49 = vector.load %arg5[%c1_75, %48, %c0_76] : memref<4x8x128xf32, #tpu.memory_space<vmem>>, vector<1x8x128xf32>
    %50 = vector.shape_cast %49 : vector<1x8x128xf32> to vector<8x128xf32>
    %c2_77 = arith.constant 2 : index
    %51 = arith.index_cast %44 : i32 to index
    %c0_78 = arith.constant 0 : index
    %52 = vector.load %arg5[%c2_77, %51, %c0_78] : memref<4x8x128xf32, #tpu.memory_space<vmem>>, vector<1x8x128xf32>
    %53 = vector.shape_cast %52 : vector<1x8x128xf32> to vector<8x128xf32>
    %c3_79 = arith.constant 3 : index
    %54 = arith.index_cast %44 : i32 to index
    %c0_80 = arith.constant 0 : index
    %55 = vector.load %arg5[%c3_79, %54, %c0_80] : memref<4x8x128xf32, #tpu.memory_space<vmem>>, vector<1x8x128xf32>
    %56 = vector.shape_cast %55 : vector<1x8x128xf32> to vector<8x128xf32>
    %57 = vector.broadcast %0 : f32 to vector<8x128xf32>
    %58 = arith.mulf %47, %57 : vector<8x128xf32>
    %59 = vector.broadcast %1 : f32 to vector<8x128xf32>
    %60 = arith.mulf %50, %59 : vector<8x128xf32>
    %61 = arith.addf %58, %60 : vector<8x128xf32>
    %62 = vector.broadcast %2 : f32 to vector<8x128xf32>
    %63 = arith.mulf %53, %62 : vector<8x128xf32>
    %64 = arith.addf %61, %63 : vector<8x128xf32>
    %65 = vector.broadcast %3 : f32 to vector<8x128xf32>
    %66 = arith.mulf %56, %65 : vector<8x128xf32>
    %67 = arith.addf %64, %66 : vector<8x128xf32>
    %68 = vector.broadcast %20 : f32 to vector<8x128xf32>
    %69 = arith.addf %67, %68 : vector<8x128xf32>
    %cst = arith.constant 5.000000e-01 : f32
    %70 = vector.broadcast %cst : f32 to vector<8x128xf32>
    %71 = arith.mulf %70, %69 : vector<8x128xf32>
    %72 = math.tanh %71 : vector<8x128xf32>
    %cst_81 = arith.constant 5.000000e-01 : f32
    %73 = vector.broadcast %cst_81 : f32 to vector<8x128xf32>
    %74 = arith.mulf %73, %72 : vector<8x128xf32>
    %cst_82 = arith.constant 5.000000e-01 : f32
    %75 = vector.broadcast %cst_82 : f32 to vector<8x128xf32>
    %76 = arith.addf %74, %75 : vector<8x128xf32>
    %77 = vector.broadcast %4 : f32 to vector<8x128xf32>
    %78 = arith.mulf %47, %77 : vector<8x128xf32>
    %79 = vector.broadcast %5 : f32 to vector<8x128xf32>
    %80 = arith.mulf %50, %79 : vector<8x128xf32>
    %81 = arith.addf %78, %80 : vector<8x128xf32>
    %82 = vector.broadcast %6 : f32 to vector<8x128xf32>
    %83 = arith.mulf %53, %82 : vector<8x128xf32>
    %84 = arith.addf %81, %83 : vector<8x128xf32>
    %85 = vector.broadcast %7 : f32 to vector<8x128xf32>
    %86 = arith.mulf %56, %85 : vector<8x128xf32>
    %87 = arith.addf %84, %86 : vector<8x128xf32>
    %88 = vector.broadcast %21 : f32 to vector<8x128xf32>
    %89 = arith.addf %87, %88 : vector<8x128xf32>
    %cst_83 = arith.constant 5.000000e-01 : f32
    %90 = vector.broadcast %cst_83 : f32 to vector<8x128xf32>
    %91 = arith.mulf %90, %89 : vector<8x128xf32>
    %92 = math.tanh %91 : vector<8x128xf32>
    %cst_84 = arith.constant 5.000000e-01 : f32
    %93 = vector.broadcast %cst_84 : f32 to vector<8x128xf32>
    %94 = arith.mulf %93, %92 : vector<8x128xf32>
    %cst_85 = arith.constant 5.000000e-01 : f32
    %95 = vector.broadcast %cst_85 : f32 to vector<8x128xf32>
    %96 = arith.addf %94, %95 : vector<8x128xf32>
    %97 = vector.broadcast %8 : f32 to vector<8x128xf32>
    %98 = arith.mulf %47, %97 : vector<8x128xf32>
    %99 = vector.broadcast %9 : f32 to vector<8x128xf32>
    %100 = arith.mulf %50, %99 : vector<8x128xf32>
    %101 = arith.addf %98, %100 : vector<8x128xf32>
    %102 = vector.broadcast %10 : f32 to vector<8x128xf32>
    %103 = arith.mulf %53, %102 : vector<8x128xf32>
    %104 = arith.addf %101, %103 : vector<8x128xf32>
    %105 = vector.broadcast %11 : f32 to vector<8x128xf32>
    %106 = arith.mulf %56, %105 : vector<8x128xf32>
    %107 = arith.addf %104, %106 : vector<8x128xf32>
    %108 = vector.broadcast %22 : f32 to vector<8x128xf32>
    %109 = arith.addf %107, %108 : vector<8x128xf32>
    %cst_86 = arith.constant 5.000000e-01 : f32
    %110 = vector.broadcast %cst_86 : f32 to vector<8x128xf32>
    %111 = arith.mulf %110, %109 : vector<8x128xf32>
    %112 = math.tanh %111 : vector<8x128xf32>
    %cst_87 = arith.constant 5.000000e-01 : f32
    %113 = vector.broadcast %cst_87 : f32 to vector<8x128xf32>
    %114 = arith.mulf %113, %112 : vector<8x128xf32>
    %cst_88 = arith.constant 5.000000e-01 : f32
    %115 = vector.broadcast %cst_88 : f32 to vector<8x128xf32>
    %116 = arith.addf %114, %115 : vector<8x128xf32>
    %117 = vector.broadcast %12 : f32 to vector<8x128xf32>
    %118 = arith.mulf %47, %117 : vector<8x128xf32>
    %119 = vector.broadcast %13 : f32 to vector<8x128xf32>
    %120 = arith.mulf %50, %119 : vector<8x128xf32>
    %121 = arith.addf %118, %120 : vector<8x128xf32>
    %122 = vector.broadcast %14 : f32 to vector<8x128xf32>
    %123 = arith.mulf %53, %122 : vector<8x128xf32>
    %124 = arith.addf %121, %123 : vector<8x128xf32>
    %125 = vector.broadcast %15 : f32 to vector<8x128xf32>
    %126 = arith.mulf %56, %125 : vector<8x128xf32>
    %127 = arith.addf %124, %126 : vector<8x128xf32>
    %128 = vector.broadcast %23 : f32 to vector<8x128xf32>
    %129 = arith.addf %127, %128 : vector<8x128xf32>
    %cst_89 = arith.constant 5.000000e-01 : f32
    %130 = vector.broadcast %cst_89 : f32 to vector<8x128xf32>
    %131 = arith.mulf %130, %129 : vector<8x128xf32>
    %132 = math.tanh %131 : vector<8x128xf32>
    %cst_90 = arith.constant 5.000000e-01 : f32
    %133 = vector.broadcast %cst_90 : f32 to vector<8x128xf32>
    %134 = arith.mulf %133, %132 : vector<8x128xf32>
    %cst_91 = arith.constant 5.000000e-01 : f32
    %135 = vector.broadcast %cst_91 : f32 to vector<8x128xf32>
    %136 = arith.addf %134, %135 : vector<8x128xf32>
    %137 = vector.broadcast %16 : f32 to vector<8x128xf32>
    %138 = arith.mulf %47, %137 : vector<8x128xf32>
    %139 = vector.broadcast %17 : f32 to vector<8x128xf32>
    %140 = arith.mulf %50, %139 : vector<8x128xf32>
    %141 = arith.addf %138, %140 : vector<8x128xf32>
    %142 = vector.broadcast %18 : f32 to vector<8x128xf32>
    %143 = arith.mulf %53, %142 : vector<8x128xf32>
    %144 = arith.addf %141, %143 : vector<8x128xf32>
    %145 = vector.broadcast %19 : f32 to vector<8x128xf32>
    %146 = arith.mulf %56, %145 : vector<8x128xf32>
    %147 = arith.addf %144, %146 : vector<8x128xf32>
    %148 = vector.broadcast %24 : f32 to vector<8x128xf32>
    %149 = arith.addf %147, %148 : vector<8x128xf32>
    %cst_92 = arith.constant 5.000000e-01 : f32
    %150 = vector.broadcast %cst_92 : f32 to vector<8x128xf32>
    %151 = arith.mulf %150, %149 : vector<8x128xf32>
    %152 = math.tanh %151 : vector<8x128xf32>
    %cst_93 = arith.constant 5.000000e-01 : f32
    %153 = vector.broadcast %cst_93 : f32 to vector<8x128xf32>
    %154 = arith.mulf %153, %152 : vector<8x128xf32>
    %cst_94 = arith.constant 5.000000e-01 : f32
    %155 = vector.broadcast %cst_94 : f32 to vector<8x128xf32>
    %156 = arith.addf %154, %155 : vector<8x128xf32>
    %157 = vector.broadcast %25 : f32 to vector<8x128xf32>
    %158 = arith.mulf %76, %157 : vector<8x128xf32>
    %159 = vector.broadcast %26 : f32 to vector<8x128xf32>
    %160 = arith.mulf %96, %159 : vector<8x128xf32>
    %161 = arith.addf %158, %160 : vector<8x128xf32>
    %162 = vector.broadcast %27 : f32 to vector<8x128xf32>
    %163 = arith.mulf %116, %162 : vector<8x128xf32>
    %164 = arith.addf %161, %163 : vector<8x128xf32>
    %165 = vector.broadcast %28 : f32 to vector<8x128xf32>
    %166 = arith.mulf %136, %165 : vector<8x128xf32>
    %167 = arith.addf %164, %166 : vector<8x128xf32>
    %168 = vector.broadcast %29 : f32 to vector<8x128xf32>
    %169 = arith.mulf %156, %168 : vector<8x128xf32>
    %170 = arith.addf %167, %169 : vector<8x128xf32>
    %171 = vector.broadcast %40 : f32 to vector<8x128xf32>
    %172 = arith.addf %170, %171 : vector<8x128xf32>
    %cst_95 = arith.constant 5.000000e-01 : f32
    %173 = vector.broadcast %cst_95 : f32 to vector<8x128xf32>
    %174 = arith.mulf %173, %172 : vector<8x128xf32>
    %175 = math.tanh %174 : vector<8x128xf32>
    %cst_96 = arith.constant 5.000000e-01 : f32
    %176 = vector.broadcast %cst_96 : f32 to vector<8x128xf32>
    %177 = arith.mulf %176, %175 : vector<8x128xf32>
    %cst_97 = arith.constant 5.000000e-01 : f32
    %178 = vector.broadcast %cst_97 : f32 to vector<8x128xf32>
    %179 = arith.addf %177, %178 : vector<8x128xf32>
    %c0_98 = arith.constant 0 : index
    %180 = arith.index_cast %44 : i32 to index
    %c0_99 = arith.constant 0 : index
    %181 = vector.load %arg6[%c0_98, %180, %c0_99] : memref<3x8x128xf32, #tpu.memory_space<vmem>>, vector<1x8x128xf32>
    %182 = vector.shape_cast %181 : vector<1x8x128xf32> to vector<8x128xf32>
    %183 = vector.shape_cast %179 : vector<8x128xf32> to vector<1x8x128xf32>
    tpu.vector_store %arg6[%c0_98, %180, %c0_99], %183 {strides = array<i32>} : memref<3x8x128xf32, #tpu.memory_space<vmem>>, vector<1x8x128xf32>,
    %184 = vector.broadcast %30 : f32 to vector<8x128xf32>
    %185 = arith.mulf %76, %184 : vector<8x128xf32>
    %186 = vector.broadcast %31 : f32 to vector<8x128xf32>
    %187 = arith.mulf %96, %186 : vector<8x128xf32>
    %188 = arith.addf %185, %187 : vector<8x128xf32>
    %189 = vector.broadcast %32 : f32 to vector<8x128xf32>
    %190 = arith.mulf %116, %189 : vector<8x128xf32>
    %191 = arith.addf %188, %190 : vector<8x128xf32>
    %192 = vector.broadcast %33 : f32 to vector<8x128xf32>
    %193 = arith.mulf %136, %192 : vector<8x128xf32>
    %194 = arith.addf %191, %193 : vector<8x128xf32>
    %195 = vector.broadcast %34 : f32 to vector<8x128xf32>
    %196 = arith.mulf %156, %195 : vector<8x128xf32>
    %197 = arith.addf %194, %196 : vector<8x128xf32>
    %198 = vector.broadcast %41 : f32 to vector<8x128xf32>
    %199 = arith.addf %197, %198 : vector<8x128xf32>
    %cst_100 = arith.constant 5.000000e-01 : f32
    %200 = vector.broadcast %cst_100 : f32 to vector<8x128xf32>
    %201 = arith.mulf %200, %199 : vector<8x128xf32>
    %202 = math.tanh %201 : vector<8x128xf32>
    %cst_101 = arith.constant 5.000000e-01 : f32
    %203 = vector.broadcast %cst_101 : f32 to vector<8x128xf32>
    %204 = arith.mulf %203, %202 : vector<8x128xf32>
    %cst_102 = arith.constant 5.000000e-01 : f32
    %205 = vector.broadcast %cst_102 : f32 to vector<8x128xf32>
    %206 = arith.addf %204, %205 : vector<8x128xf32>
    %c1_103 = arith.constant 1 : index
    %207 = arith.index_cast %44 : i32 to index
    %c0_104 = arith.constant 0 : index
    %208 = vector.load %arg6[%c1_103, %207, %c0_104] : memref<3x8x128xf32, #tpu.memory_space<vmem>>, vector<1x8x128xf32>
    %209 = vector.shape_cast %208 : vector<1x8x128xf32> to vector<8x128xf32>
    %210 = vector.shape_cast %206 : vector<8x128xf32> to vector<1x8x128xf32>
    tpu.vector_store %arg6[%c1_103, %207, %c0_104], %210 {strides = array<i32>} : memref<3x8x128xf32, #tpu.memory_space<vmem>>, vector<1x8x128xf32>,
    %211 = vector.broadcast %35 : f32 to vector<8x128xf32>
    %212 = arith.mulf %76, %211 : vector<8x128xf32>
    %213 = vector.broadcast %36 : f32 to vector<8x128xf32>
    %214 = arith.mulf %96, %213 : vector<8x128xf32>
    %215 = arith.addf %212, %214 : vector<8x128xf32>
    %216 = vector.broadcast %37 : f32 to vector<8x128xf32>
    %217 = arith.mulf %116, %216 : vector<8x128xf32>
    %218 = arith.addf %215, %217 : vector<8x128xf32>
    %219 = vector.broadcast %38 : f32 to vector<8x128xf32>
    %220 = arith.mulf %136, %219 : vector<8x128xf32>
    %221 = arith.addf %218, %220 : vector<8x128xf32>
    %222 = vector.broadcast %39 : f32 to vector<8x128xf32>
    %223 = arith.mulf %156, %222 : vector<8x128xf32>
    %224 = arith.addf %221, %223 : vector<8x128xf32>
    %225 = vector.broadcast %42 : f32 to vector<8x128xf32>
    %226 = arith.addf %224, %225 : vector<8x128xf32>
    %cst_105 = arith.constant 5.000000e-01 : f32
    %227 = vector.broadcast %cst_105 : f32 to vector<8x128xf32>
    %228 = arith.mulf %227, %226 : vector<8x128xf32>
    %229 = math.tanh %228 : vector<8x128xf32>
    %cst_106 = arith.constant 5.000000e-01 : f32
    %230 = vector.broadcast %cst_106 : f32 to vector<8x128xf32>
    %231 = arith.mulf %230, %229 : vector<8x128xf32>
    %cst_107 = arith.constant 5.000000e-01 : f32
    %232 = vector.broadcast %cst_107 : f32 to vector<8x128xf32>
    %233 = arith.addf %231, %232 : vector<8x128xf32>
    %c2_108 = arith.constant 2 : index
    %234 = arith.index_cast %44 : i32 to index
    %c0_109 = arith.constant 0 : index
    %235 = vector.load %arg6[%c2_108, %234, %c0_109] : memref<3x8x128xf32, #tpu.memory_space<vmem>>, vector<1x8x128xf32>
    %236 = vector.shape_cast %235 : vector<1x8x128xf32> to vector<8x128xf32>
    %237 = vector.shape_cast %233 : vector<8x128xf32> to vector<1x8x128xf32>
    tpu.vector_store %arg6[%c2_108, %234, %c0_109], %237 {strides = array<i32>} : memref<3x8x128xf32, #tpu.memory_space<vmem>>, vector<1x8x128xf32>,
    %c1_i32 = arith.constant 1 : i32
    return
  }
  func.func @transform_0(%arg0: i32) -> (i32, i32) {
    %c0_i32 = arith.constant 0 : i32
    %c0_i32_0 = arith.constant 0 : i32
    %c0_i32_1 = arith.constant 0 : i32
    return %c0_i32, %c0_i32_0 : i32, i32
  }
  func.func @transform_1(%arg0: i32) -> i32 {
    %c0_i32 = arith.constant 0 : i32
    %c0_i32_0 = arith.constant 0 : i32
    return %c0_i32 : i32
  }
  func.func @transform_2(%arg0: i32) -> (i32, i32) {
    %c0_i32 = arith.constant 0 : i32
    %c0_i32_0 = arith.constant 0 : i32
    %c0_i32_1 = arith.constant 0 : i32
    return %c0_i32, %c0_i32_0 : i32, i32
  }
  func.func @transform_3(%arg0: i32) -> i32 {
    %c0_i32 = arith.constant 0 : i32
    %c0_i32_0 = arith.constant 0 : i32
    return %c0_i32 : i32
  }
  func.func @transform_4(%arg0: i32) -> (i32, i32, i32) {
    %c0_i32 = arith.constant 0 : i32
    %c0_i32_0 = arith.constant 0 : i32
    %c0_i32_1 = arith.constant 0 : i32
    return %c0_i32, %arg0, %c0_i32_0 : i32, i32, i32
  }
  func.func @transform_5(%arg0: i32) -> (i32, i32, i32) {
    %c0_i32 = arith.constant 0 : i32
    %c0_i32_0 = arith.constant 0 : i32
    %c0_i32_1 = arith.constant 0 : i32
    return %c0_i32, %arg0, %c0_i32_0 : i32, i32, i32
  }
}

</mosaic_0001>

<bundles_post_ra>
// kernel: tpu_custom_call.1
= control target key start
LH: loop header
LB: loop body
LE: loop exit
PB: predicated region body
PF: predicated region fallthrough
CT: control target
= control target key end

     0   :  { %10 = vsyncpa [#allocation5], 0  ;;  %s689_s0 = inlined_call_operand.vmem [shape: f32[5,4], index: 0, kind: input, shape index: {}]   ;;  %s690_s1 = inlined_call_operand.vmem [shape: f32[5], index: 1, kind: input, shape index: {}]   ;;  %s691_s2 = inlined_call_operand.vmem [shape: f32[3,5], index: 2, kind: input, shape index: {}]   ;;  %s692_s3 = inlined_call_operand.vmem [shape: f32[3], index: 3, kind: input, shape index: {}]   ;;  %s693_s4 = inlined_call_operand.hbm [shape: f32[4,8,128], index: 4, kind: input, shape index: {}]   ;;  %s694_s5 = inlined_call_operand.hbm [shape: f32[3,8,128], index: 5, kind: output, shape index: {}]  }
   0x1   :  { %11 = vsyncpa [#allocation7], 0 }
   0x2   :  { %12 = vsyncpa [#allocation10], 0 }
   0x3   :  { %13 = vsyncpa [#allocation3], 0  ;;  %s31_s20 = sshll.u32 %s690_s1, 4  ;;  %s32_s20 = int_to_ptr.vmem [resolvable:$true] %s31_s20 }
   0x4   :  { %14 = vsyncpa [#allocation4], 0  ;;  %s21_s23 = sshll.u32 %s689_s0, 4  ;;  %s374_s24 = scalar_lea.vmem %s32_s20, 16  ;;  %s22_s23 = int_to_ptr.vmem [resolvable:$true] %s21_s23 }
   0x5   :  { %p375_p0 = scmp.ne.s32.totalorder %s32_s20, %s374_s24  ;;  %p379_p1 = scmp.lt.s32.totalorder %s32_s20, %s32_s20 }
   0x6   :  { %p380_p2 = scmp.lt.s32.totalorder %s374_s24, %s374_s24 }
   0x8   :  { %p381_p3 = por %p380_p2, %p379_p1 }
   0xa   :  { %p382_p4 = pnand %p381_p3, %p375_p0 }
   0xc   :  { %385 = shalt.err (!%p382_p4)
}
   0xd   :  { %s476_s25 = smov [#allocation6]   ;;  %s386_s26 = scalar_lea.vmem %s22_s23, 128 }
   0xe   :  { %34 = dma.vmem_to_smem %s32_s20, 16, %s476_s25, [#allocation7]  }
   0xf   :  { %p387_p5 = scmp.ne.s32.totalorder %s22_s23, %s386_s26  ;;  %p391_p6 = scmp.lt.s32.totalorder %s22_s23, %s22_s23 }
  0x10   :  { %p392_p7 = scmp.lt.s32.totalorder %s386_s26, %s386_s26 }
  0x12   :  { %p393_p8 = por %p392_p7, %p391_p6 }
  0x14   :  { %p394_p9 = pnand %p393_p8, %p387_p5 }
  0x16   :  { %397 = shalt.err (!%p394_p9)
}
  0x17   :  { %s477_s1 = smov [#allocation2]   ;;  %s41_s28 = sshll.u32 %s691_s2, 4  ;;  %s42_s28 = int_to_ptr.vmem [resolvable:$true] %s41_s28 }
  0x18   :  { %24 = dma.vmem_to_smem %s22_s23, 128, %s477_s1, [#allocation5]  }
  0x19   :  { %s51_s6 = sshll.u32 %s692_s3, 4  ;;  %s398_s7 = scalar_lea.vmem %s42_s28, 64  ;;  %s52_s6 = int_to_ptr.vmem [resolvable:$true] %s51_s6 }
  0x1a   :  { %p399_p10 = scmp.ne.s32.totalorder %s42_s28, %s398_s7  ;;  %p403_p11 = scmp.lt.s32.totalorder %s42_s28, %s42_s28 }
  0x1b   :  { %p404_p12 = scmp.lt.s32.totalorder %s398_s7, %s398_s7 }
  0x1d   :  { %p405_p13 = por %p404_p12, %p403_p11 }
  0x1f   :  { %p406_p0 = pnand %p405_p13, %p399_p10 }
  0x21   :  { %409 = shalt.err (!%p406_p0)
}
  0x22   :  { %s478_s8 = smov [#allocation8]   ;;  %s410_s9 = scalar_lea.vmem %s52_s6, 16 }
  0x23   :  { %44 = dma.vmem_to_smem %s42_s28, 64, %s478_s8, [#allocation7]  }
  0x24   :  { %p411_p1 = scmp.ne.s32.totalorder %s52_s6, %s410_s9  ;;  %p415_p2 = scmp.lt.s32.totalorder %s52_s6, %s52_s6 }
  0x25   :  { %p416_p3 = scmp.lt.s32.totalorder %s410_s9, %s410_s9 }
  0x27   :  { %p417_p4 = por %p416_p3, %p415_p2 }
  0x29   :  { %p418_p5 = pnand %p417_p4, %p411_p1 }
  0x2b   :  { %421 = shalt.err (!%p418_p5)
}
  0x2c   :  { %s479_s2 = smov [#allocation9]   ;;  %s480_s3 = smov [#allocation11]  }
  0x2d   :  { %54 = dma.vmem_to_smem %s52_s6, 16, %s479_s2, [#allocation10]  }
  0x2e   :  { %s60_s10 = sshll.u32 %s480_s3, 4  ;;  %s422_s13 = scalar_lea.hbm %s693_s4, 512  ;;  %s61_s10 = int_to_ptr.vmem [resolvable:$true] %s60_s10 }
  0x2f   :  { %p423_p6 = scmp.ne.s32.totalorder %s693_s4, %s422_s13  ;;  %p426_p7 = scmp.lt.u32.totalorder %s422_s13, %s693_s4 }
  0x31   :  { %p428_p8 = pnand %p426_p7, %p423_p6 }
  0x33   :  { %431 = shalt.err (!%p428_p8)
}
  0x34   :  { %s432_s18 = scalar_lea.vmem %s61_s10, 512  ;;  %p437_p10 = scmp.lt.s32.totalorder %s61_s10, %s61_s10 }
  0x35   :  { %p433_p9 = scmp.ne.s32.totalorder %s61_s10, %s432_s18  ;;  %p438_p11 = scmp.lt.s32.totalorder %s432_s18, %s432_s18 }
  0x37   :  { %p439_p12 = por %p438_p11, %p437_p10 }
  0x39   :  { %p440_p13 = pnand %p439_p12, %p433_p9 }
  0x3b   :  { %443 = shalt.err (!%p440_p13)
}
  0x3c   :  { %s481_s19 = smov 128   ;;  %s482_s20 = smov 8  }
  0x3d   :  { %66 = dma.hbm_to_vmem [thread:$0]  %s693_s4, 512, %s61_s10, [#allocation3], %s481_s19, %s481_s19, %s482_s20  }
  0x3e   :  { %466 = dma.done.wait [#allocation5], 128  }
  0x3f   :  { %467 = vsyncadd [#allocation5], 4294967168 }
  0x40   :  { %468 = dma.done.wait [#allocation7], 80  }
  0x41   :  { %469 = vsyncadd [#allocation7], 4294967216 }
  0x42   :  { %470 = dma.done.wait [#allocation10], 16  }
  0x43   :  { %471 = vsyncadd [#allocation10], 4294967280 }
  0x44   :  { %472 = dma.done.wait [#allocation3], 512  }
  0x45   :  { %473 = vsyncadd [#allocation3], 4294966784 }
  0x46   :  { %82 = sfence }
  0x47   :  { %s83_s23 = sld [smem:[#allocation2]]  ;;  %s311_s24 = sld [smem:[#allocation2 + $0x1]]  ;;  %v549_v0 = vld [vmem:[#allocation11] sm:$0xff]  ;;  %v551_v1 = vld [vmem:[#allocation11 + $0x8] sm:$0xff]  ;;  %v557_v2 = vld [vmem:[#allocation11 + $0x10] sm:$0xff] }
  0x48   :  { %s312_s25 = sld [smem:[#allocation2 + $0x2]]  ;;  %s313_s26 = sld [smem:[#allocation2 + $0x3]]  ;;  %v559_v3 = vld [vmem:[#allocation11 + $0x18] sm:$0xff] }
  0x49   :  { %s314_s1 = sld [smem:[#allocation2 + $0x80]]  ;;  %s315_s0 = sld [smem:[#allocation2 + $0x81]] }
  0x4a   :  { %s541_s27 = sld [smem:[#allocation2 + $0x82]]  ;;  %s543_s28 = sld [smem:[#allocation2 + $0x83]] }
  0x4b   :  { %s545_s4 = sld [smem:[#allocation2 + $0x100]]  ;;  %s547_s29 = sld [smem:[#allocation2 + $0x101]] }
  0x4c   :  { %s553_s30 = sld [smem:[#allocation2 + $0x102]]  ;;  %s555_s6 = sld [smem:[#allocation2 + $0x103]] }
  0x4d   :  { %s561_s7 = sld [smem:[#allocation2 + $0x180]]  ;;  %s563_s8 = sld [smem:[#allocation2 + $0x181]]  ;;  %v136_v4 = vstv %s83_s23  ;;  %v138_v5 = vstv %s311_s24 }
  0x4e   :  { %s565_s9 = sld [smem:[#allocation2 + $0x182]]  ;;  %s567_s2 = sld [smem:[#allocation2 + $0x183]]  ;;  %v137_v6 = vmul.f32 %v136_v4, %v549_v0  ;;  %v139_v7 = vmul.f32 %v138_v5, %v551_v1  ;;  %v141_v8 = vstv %s312_s25  ;;  %v144_v9 = vstv %s313_s26 }
  0x4f   :  { %v142_v10 = vmul.f32 %v141_v8, %v557_v2  ;;  %v145_v11 = vmul.f32 %v144_v9, %v559_v3  ;;  %v153_v12 = vstv %s314_s1  ;;  %v155_v13 = vstv %s315_s0  ;;  %s573_s3 = sld [smem:[#allocation2 + $0x200]]  ;;  %s575_s10 = sld [smem:[#allocation2 + $0x201]] }
  0x50   :  { %v140_v14 = vadd.f32 %v139_v7, %v137_v6  ;;  %v154_v15 = vmul.f32 %v153_v12, %v549_v0  ;;  %v156_v16 = vmul.f32 %v155_v13, %v551_v1  ;;  %v158_v17 = vstv %s541_s27  ;;  %s580_s11 = sld [smem:[#allocation6]]  ;;  %s582_s12 = sld [smem:[#allocation6 + $0x1]] }
  0x51   :  { %v159_v18 = vmul.f32 %v158_v17, %v557_v2  ;;  %v161_v19 = vstv %s543_s28  ;;  %v170_v20 = vstv %s545_s4  ;;  %v172_v21 = vstv %s547_s29  ;;  %s588_s13 = sld [smem:[#allocation6 + $0x2]]  ;;  %s590_s14 = sld [smem:[#allocation6 + $0x3]] }
  0x52   :  { %v143_v22 = vadd.f32 %v142_v10, %v140_v14  ;;  %v157_v23 = vadd.f32 %v156_v16, %v154_v15  ;;  %v162_v24 = vmul.f32 %v161_v19, %v559_v3  ;;  %v171_v25 = vmul.f32 %v170_v20, %v549_v0  ;;  %s594_s15 = sld [smem:[#allocation2 + $0x202]]  ;;  %s596_s16 = sld [smem:[#allocation2 + $0x203]] }
  0x53   :  { %v173_v26 = vmul.f32 %v172_v21, %v551_v1  ;;  %v175_v27 = vstv %s553_s30  ;;  %v178_v28 = vstv %s555_s6  ;;  %v187_v29 = vstv %s561_s7  ;;  %s613_s17 = sld [smem:[#allocation6 + $0x4]]  ;;  %s625_s18 = sld [smem:[#allocation8]] }
  0x54   :  { %v146_v30 = vadd.f32 %v145_v11, %v143_v22  ;;  %v160_v31 = vadd.f32 %v159_v18, %v157_v23  ;;  %v176_v32 = vmul.f32 %v175_v27, %v557_v2  ;;  %v179_v33 = vmul.f32 %v178_v28, %v559_v3  ;;  %s627_s21 = sld [smem:[#allocation8 + $0x1]]  ;;  %s630_s22 = sld [smem:[#allocation8 + $0x80]] }
  0x55   :  { %v174_v34 = vadd.f32 %v173_v26, %v171_v25  ;;  %v188_v35 = vmul.f32 %v187_v29, %v549_v0  ;;  %v189_v36 = vstv %s563_s8  ;;  %v192_v37 = vstv %s565_s9  ;;  %s632_s23 = sld [smem:[#allocation8 + $0x100]]  ;;  %s634_s24 = sld [smem:[#allocation8 + $0x81]] }
  0x56   :  { %v163_v38 = vadd.f32 %v162_v24, %v160_v31  ;;  %v190_v39 = vmul.f32 %v189_v36, %v551_v1  ;;  %v193_v40 = vmul.f32 %v192_v37, %v557_v2  ;;  %v195_v41 = vstv %s567_s2  ;;  %s636_s25 = sld [smem:[#allocation8 + $0x101]]  ;;  %s638_s26 = sld [smem:[#allocation8 + $0x2]] }
  0x57   :  { %v147_v42 = vstv %s580_s11  ;;  %v164_v43 = vstv %s582_s12  ;;  %v177_v44 = vadd.f32 %v176_v32, %v174_v34  ;;  %v196_v45 = vmul.f32 %v195_v41, %v559_v3  ;;  %s640_s1 = sld [smem:[#allocation8 + $0x82]]  ;;  %s644_s27 = sld [smem:[#allocation8 + $0x3]] }
  0x58   :  { %v148_v46 = vadd.f32 %v147_v42, %v146_v30  ;;  %v165_v47 = vadd.f32 %v164_v43, %v163_v38  ;;  %v181_v48 = vstv %s588_s13  ;;  %v191_v49 = vadd.f32 %v190_v39, %v188_v35  ;;  %s642_s0 = sld [smem:[#allocation8 + $0x102]]  ;;  %s646_s28 = sld [smem:[#allocation8 + $0x83]] }
  0x59   :  { %v180_v50 = vadd.f32 %v179_v33, %v177_v44  ;;  %v198_v51 = vstv %s590_s14  ;;  %v204_v52 = vstv %s573_s3  ;;  %v206_v53 = vstv %s575_s10  ;;  %s648_s4 = sld [smem:[#allocation8 + $0x103]]  ;;  %s656_s29 = sld [smem:[#allocation8 + $0x4]] }
  0x5a   :  { %v149_v54 = vmul.f32 0.5, %v148_v46  ;;  %v166_v55 = vmul.f32 0.5, %v165_v47  ;;  %v194_v56 = vadd.f32 %v193_v40, %v191_v49  ;;  %v205_v57 = vmul.f32 %v204_v52, %v549_v0  ;;  %s660_s30 = sld [smem:[#allocation8 + $0x84]]  ;;  %s668_s7 = sld [smem:[#allocation9]] }
  0x5b   :  { %v182_v58 = vadd.f32 %v181_v48, %v180_v50  ;;  %v207_v59 = vmul.f32 %v206_v53, %v551_v1  ;;  %v209_v60 = vstv %s594_s15  ;;  %v212_v61 = vstv %s596_s16  ;;  %s662_s6 = sld [smem:[#allocation8 + $0x104]]  ;;  %s348_s8 = sld [smem:[#allocation9 + $0x1]] }
  0x5c   :  { %358 = vtanh.f32 %v149_v54  ;;  %v197_v62 = vadd.f32 %v196_v45, %v194_v56  ;;  %v210_v63 = vmul.f32 %v209_v60, %v557_v2  ;;  %v213_v6 = vmul.f32 %v212_v61, %v559_v3  ;;  %s349_s9 = sld [smem:[#allocation9 + $0x2]]  ;;  %s483_s2 = smov [#allocation12]  }
  0x5d   :  { %360 = vtanh.f32 %v166_v55  ;;  %v183_v4 = vmul.f32 0.5, %v182_v58  ;;  %v208_v5 = vadd.f32 %v207_v59, %v205_v57  ;;  %v215_v8 = vstv %s613_s17  ;;  %s291_s3 = sshll.u32 %s483_s2, 4  ;;  %s292_s3 = int_to_ptr.vmem [resolvable:$true] %s291_s3 }
  0x5e   :  { %v199_v7 = vadd.f32 %v198_v51, %v197_v62  ;;  %v221_v14 = vstv %s625_s18  ;;  %v242_v15 = vstv %s630_s22  ;;  %v264_v16 = vstv %s632_s23  ;;  %s444_s10 = scalar_lea.vmem %s292_s3, 384  ;;  %p449_p1 = scmp.lt.s32.totalorder %s292_s3, %s292_s3 }
  0x5f   :  { %362 = vtanh.f32 %v183_v4  ;;  %v211_v0 = vadd.f32 %v210_v63, %v208_v5  ;;  %v223_v19 = vstv %s627_s21  ;;  %v244_v20 = vstv %s634_s24  ;;  %p445_p0 = scmp.ne.s32.totalorder %s292_s3, %s444_s10  ;;  %p450_p2 = scmp.lt.s32.totalorder %s444_s10, %s444_s10 }
  0x60   :  { %v200_v1 = vmul.f32 0.5, %v199_v7  ;;  %v266_v21 = vstv %s636_s25  ;;  %v226_v24 = vstv %s638_s26  ;;  %v247_v25 = vstv %s640_s1 }
  0x61   :  { %v214_v9 = vadd.f32 %v213_v6, %v211_v0  ;;  %v269_v29 = vstv %s642_s0  ;;  %v229_v36 = vstv %s644_s27  ;;  %v250_v37 = vstv %s646_s28  ;;  %p451_p3 = por %p450_p2, %p449_p1 }
  0x62   :  { %364 = vtanh.f32 %v200_v1  ;;  %v272_v38 = vstv %s648_s4  ;;  %v232_v54 = vstv %s656_s29  ;;  %v253_v55 = vstv %s660_s30 }
  0x63   :  { %v216_v2 = vadd.f32 %v215_v8, %v214_v9  ;;  %v275_v56 = vstv %s662_s6  ;;  %v235_v4 = vstv %s668_s7  ;;  %v256_v5 = vstv %s348_s8  ;;  %p452_p4 = pnand %p451_p3, %p445_p0 }
  0x64   :  { %v278_v6 = vstv %s349_s9 }
  0x65   :  { %v217_v3 = vmul.f32 0.5, %v216_v2 }
  0x66   :  { %v359_v10 = vpop.eup %358 }
  0x67   :  { %v361_v11 = vpop.eup %360  ;;  %v151_v12 = vmul.f32 0.5, %v359_v10  ;;  %366 = vtanh.f32 %v217_v3 }
  0x68   :  { %v168_v13 = vmul.f32 0.5, %v361_v11 }
  0x69   :  { %v363_v17 = vpop.eup %362  ;;  %v152_v18 = vadd.f32 0.5, %v151_v12 }
  0x6a   :  { %v169_v22 = vadd.f32 0.5, %v168_v13  ;;  %v185_v23 = vmul.f32 0.5, %v363_v17 }
  0x6b   :  { %v222_v26 = vmul.f32 %v221_v14, %v152_v18  ;;  %v243_v27 = vmul.f32 %v242_v15, %v152_v18  ;;  %v265_v28 = vmul.f32 %v264_v16, %v152_v18 }
  0x6c   :  { %v365_v30 = vpop.eup %364  ;;  %v186_v31 = vadd.f32 0.5, %v185_v23  ;;  %v224_v32 = vmul.f32 %v223_v19, %v169_v22  ;;  %v245_v33 = vmul.f32 %v244_v20, %v169_v22  ;;  %v267_v34 = vmul.f32 %v266_v21, %v169_v22 }
  0x6d   :  { %v202_v35 = vmul.f32 0.5, %v365_v30 }
  0x6e   :  { %v225_v39 = vadd.f32 %v224_v32, %v222_v26  ;;  %v227_v40 = vmul.f32 %v226_v24, %v186_v31  ;;  %v246_v41 = vadd.f32 %v245_v33, %v243_v27  ;;  %v248_v42 = vmul.f32 %v247_v25, %v186_v31 }
  0x6f   :  { %v203_v43 = vadd.f32 0.5, %v202_v35  ;;  %v268_v44 = vadd.f32 %v267_v34, %v265_v28  ;;  %v270_v45 = vmul.f32 %v269_v29, %v186_v31 }
  0x70   :  { %v228_v46 = vadd.f32 %v227_v40, %v225_v39  ;;  %v249_v47 = vadd.f32 %v248_v42, %v246_v41 }
  0x71   :  { %v367_v48 = vpop.eup %366  ;;  %v230_v49 = vmul.f32 %v229_v36, %v203_v43  ;;  %v251_v50 = vmul.f32 %v250_v37, %v203_v43  ;;  %v271_v51 = vadd.f32 %v270_v45, %v268_v44  ;;  %v273_v52 = vmul.f32 %v272_v38, %v203_v43 }
  0x72   :  { %v219_v53 = vmul.f32 0.5, %v367_v48 }
  0x73   :  { %v231_v58 = vadd.f32 %v230_v49, %v228_v46  ;;  %v252_v59 = vadd.f32 %v251_v50, %v249_v47  ;;  %v274_v60 = vadd.f32 %v273_v52, %v271_v51 }
  0x74   :  { %v220_v57 = vadd.f32 0.5, %v219_v53 }
  0x76   :  { %v233_v61 = vmul.f32 %v232_v54, %v220_v57  ;;  %v254_v62 = vmul.f32 %v253_v55, %v220_v57  ;;  %v276_v63 = vmul.f32 %v275_v56, %v220_v57 }
  0x78   :  { %v234_v7 = vadd.f32 %v233_v61, %v231_v58  ;;  %v255_v0 = vadd.f32 %v254_v62, %v252_v59  ;;  %v277_v1 = vadd.f32 %v276_v63, %v274_v60 }
  0x7a   :  { %v236_v8 = vadd.f32 %v235_v4, %v234_v7  ;;  %v257_v9 = vadd.f32 %v256_v5, %v255_v0  ;;  %v279_v2 = vadd.f32 %v278_v6, %v277_v1 }
  0x7c   :  { %v237_v3 = vmul.f32 0.5, %v236_v8  ;;  %v258_v10 = vmul.f32 0.5, %v257_v9  ;;  %v280_v11 = vmul.f32 0.5, %v279_v2 }
  0x7e   :  { %368 = vtanh.f32 %v237_v3 }
  0x7f   :  { %370 = vtanh.f32 %v258_v10 }
  0x80   :  { %372 = vtanh.f32 %v280_v11 }
  0x88   :  { %v369_v12 = vpop.eup %368 }
  0x89   :  { %v371_v13 = vpop.eup %370  ;;  %v239_v14 = vmul.f32 0.5, %v369_v12 }
  0x8a   :  { %v373_v15 = vpop.eup %372  ;;  %v260_v16 = vmul.f32 0.5, %v371_v13 }
  0x8b   :  { %v240_v17 = vadd.f32 0.5, %v239_v14  ;;  %v282_v18 = vmul.f32 0.5, %v373_v15 }
  0x8c   :  { %v261_v19 = vadd.f32 0.5, %v260_v16 }
  0x8d   :  { %241 = vst [vmem:[#allocation12] sm:$0xff] %v240_v17  ;;  %v283_v20 = vadd.f32 0.5, %v282_v18 }
  0x8e   :  { %263 = vst [vmem:[#allocation12 + $0x8] sm:$0xff] %v261_v19 }
  0x8f   :  { %285 = vst [vmem:[#allocation12 + $0x10] sm:$0xff] %v283_v20 }
  0x90   :  { %455 = shalt.err (!%p452_p4)
}
  0x91   :  { %s456_s13 = scalar_lea.hbm %s694_s5, 384 }
  0x92   :  { %p457_p5 = scmp.ne.s32.totalorder %s694_s5, %s456_s13  ;;  %p460_p6 = scmp.lt.u32.totalorder %s456_s13, %s694_s5 }
  0x94   :  { %p462_p7 = pnand %p460_p6, %p457_p5 }
  0x96   :  { %465 = shalt.err (!%p462_p7)
}
  0x97   :  { %297 = dma.vmem_to_hbm [thread:$0]  %s292_s3, 384, %s694_s5, [#allocation4], %s481_s19, %s481_s19, %s482_s20  }
  0x98   :  { %474 = dma.done.wait [#allocation4], 384  }
  0x99   :  { %475 = vsyncadd [#allocation4], 4294966912 }
  0x9a   :  { %301 = vsyncpa [#allocation3], 1 }
  0x9b   :  { %302 = vsyncpa [#allocation4], 1 }
  0x9c   :  { %303 = vsyncpa [#allocation5], 1 }
  0x9d   :  { %304 = vsyncpa [#allocation7], 1 }
  0x9e   :  { %305 = vsyncpa [#allocation10], 1 }

</bundles_post_ra>
